<compile_context>
chip_gen: v7x
topology: tpu7x:2x2x1
jax: 0.10.0
libtpu: 0.0.40
codegen_flags: <defaults>
</compile_context>

<pallas_src>
import jax
import jax.numpy as jnp
from jax.experimental import pallas as pl
from jax.experimental.pallas import tpu as pltpu


def _linear_cast_kernel(x_ref, w_ref, b_ref, o_ref):
    # grid = (vocab, M, K); K (reduction) is innermost.
    k = pl.program_id(2)

    @pl.when(k == 0)
    def _():
        # Fold the f32 bias into the accumulator init (replaces the zero fill).
        o_ref[...] = jnp.broadcast_to(b_ref[...], o_ref.shape)

    # bf16 x bf16 -> f32 accumulation on the MXU; this is the .float() cast.
    o_ref[...] += jnp.dot(
        x_ref[...], w_ref[...], preferred_element_type=jnp.float32
    )


def _round_up(x, m):
    return (x + m - 1) // m * m


def cast_output_to_float_linear(x, w, b, *, tm=1024, tn=1024, tk=512):
    """x: (B, S, H) bf16, w: (H, V) bf16, b: (V,) f32 -> (B, S, V) f32."""
    B, S, H = x.shape
    Hw, V = w.shape
    assert H == Hw
    M = B * S

    # Clamp tile sizes to the (128-aligned) problem size; keeps tiles lane-dense
    # (multiples of 128) and MXU-friendly even for tiny shapes.
    tm = min(tm, _round_up(M, 128))
    tn = min(tn, _round_up(V, 128))
    tk = min(tk, _round_up(H, 128))

    Mp = _round_up(M, tm)
    Kp = _round_up(H, tk)
    Vp = _round_up(V, tn)

    x2d = x.reshape(M, H)
    if (Mp, Kp) != (M, H):
        x2d = jnp.pad(x2d, ((0, Mp - M), (0, Kp - H)))
    wp = w
    if (Kp, Vp) != (H, V):
        wp = jnp.pad(w, ((0, Kp - H), (0, Vp - V)))
    bp = b.astype(jnp.float32)
    if Vp != V:
        bp = jnp.pad(bp, (0, Vp - V))
    b2d = bp.reshape(1, Vp)

    n_n = Vp // tn
    n_m = Mp // tm
    n_k = Kp // tk
    grid = (n_n, n_m, n_k)  # vocab-major: megacore split partitions the weight

    # Double-buffered VMEM footprint (x, w, bias, out blocks), with headroom.
    vmem_bytes = 2 * (tm * tk * 2 + tk * tn * 2 + tn * 4 + tm * tn * 4)
    vmem_limit = min(max(int(vmem_bytes * 1.5), 32 << 20), 48 << 20)

    # Bytes actually streamed, including re-reads across the other tiled axis.
    cost = pl.CostEstimate(
        flops=2 * M * H * V,
        transcendentals=0,
        bytes_accessed=(Mp * Kp * 2) * n_n      # activations, re-read per vocab tile
        + (Kp * Vp * 2) * n_m                   # weight, re-read per M tile
        + (Vp * 4) * n_m                        # bias
        + (Mp * Vp * 4),                        # f32 output
    )

    out = pl.pallas_call(
        _linear_cast_kernel,
        out_shape=jax.ShapeDtypeStruct((Mp, Vp), jnp.float32),
        grid_spec=pltpu.PrefetchScalarGridSpec(
            num_scalar_prefetch=0,
            grid=grid,
            in_specs=[
                pl.BlockSpec((tm, tk), lambda j, i, k: (i, k)),   # activations
                pl.BlockSpec((tk, tn), lambda j, i, k: (k, j)),   # weight
                pl.BlockSpec((1, tn), lambda j, i, k: (0, j)),    # bias (f32)
            ],
            out_specs=pl.BlockSpec((tm, tn), lambda j, i, k: (i, j)),
        ),
        compiler_params=pltpu.CompilerParams(
            dimension_semantics=("parallel", "parallel", "arbitrary"),
            vmem_limit_bytes=vmem_limit,
        ),
        cost_estimate=cost,
    )(x2d, wp, b2d)

    if (Mp, Vp) != (M, V):
        out = out[:M, :V]
    return out.reshape(B, S, V)


if __name__ == "__main__":
    # Small shapes implied by an LM-head linear: batch=2, seq=8, hidden=32, vocab=64.
    B, S, H, V = 2, 8, 32, 64

    key = jax.random.PRNGKey(0)
    kx, kw, kb = jax.random.split(key, 3)

    x = jax.random.normal(kx, (B, S, H), dtype=jnp.float32).astype(jnp.bfloat16)
    w = (jax.random.normal(kw, (H, V), dtype=jnp.float32) * 0.02).astype(jnp.bfloat16)
    b = jax.random.normal(kb, (V,), dtype=jnp.float32) * 0.01

    out = cast_output_to_float_linear(x, w, b)
    out = jax.block_until_ready(out)

    # Reference (plain JAX, f32 accumulation of bf16 inputs + f32 bias = .float()).
    ref = (
        jnp.dot(x.reshape(B * S, H), w, preferred_element_type=jnp.float32)
        + b[None, :]
    ).reshape(B, S, V)

    assert out.dtype == jnp.float32
    assert out.shape == (B, S, V)
    assert jnp.allclose(out, ref, atol=1e-5, rtol=1e-5)

    print("KERNEL_OK")
</pallas_src>

<mosaic_0001>
module attributes {stable_mosaic.version = 11 : i64} {
  func.func @_linear_cast_kernel(%arg0: i32, %arg1: i32, %arg2: i32, %arg3: memref<128x128xbf16, #tpu.memory_space<vmem>>, %arg4: memref<128x128xbf16, #tpu.memory_space<vmem>>, %arg5: memref<1x128xf32, #tpu.memory_space<vmem>>, %arg6: memref<128x128xf32, #tpu.memory_space<vmem>>) attributes {dimension_semantics = [#tpu.dimension_semantics<parallel>, #tpu.dimension_semantics<parallel>, #tpu.dimension_semantics<arbitrary>], iteration_bounds = array<i64: 1, 1, 1>, scalar_prefetch = 0 : i64, scratch_operands = 0 : i64, tpu.core_type = #tpu.core_type<tc>, window_params = [{transform_indices = @transform_0, window_bounds = array<i64: 128, 128>}, {transform_indices = @transform_1, window_bounds = array<i64: 128, 128>}, {transform_indices = @transform_2, window_bounds = array<i64: 1, 128>}, {transform_indices = @transform_3, window_bounds = array<i64: 128, 128>}]} {
    %c0_i32 = arith.constant 0 : i32
    %0 = arith.cmpi eq, %arg2, %c0_i32 : i32
    %1 = arith.extui %0 : i1 to i32
    %c0_i32_0 = arith.constant 0 : i32
    %2 = arith.cmpi ne, %1, %c0_i32_0 : i32
    scf.if %2 {
      %c0_8 = arith.constant 0 : index
      %c0_9 = arith.constant 0 : index
      %9 = vector.load %arg5[%c0_8, %c0_9] : memref<1x128xf32, #tpu.memory_space<vmem>>, vector<1x128xf32>
      %10 = vector.shape_cast %9 : vector<1x128xf32> to vector<1x128xf32>
      %11 = vector.broadcast %10 : vector<1x128xf32> to vector<128x128xf32>
      %c0_10 = arith.constant 0 : index
      %c0_11 = arith.constant 0 : index
      %12 = vector.load %arg6[%c0_10, %c0_11] : memref<128x128xf32, #tpu.memory_space<vmem>>, vector<128x128xf32>
      tpu.vector_store %arg6[%c0_10, %c0_11], %11 {strides = array<i32>} : memref<128x128xf32, #tpu.memory_space<vmem>>, vector<128x128xf32>,
    } else {
    }
    %c0 = arith.constant 0 : index
    %c0_1 = arith.constant 0 : index
    %3 = vector.load %arg6[%c0, %c0_1] : memref<128x128xf32, #tpu.memory_space<vmem>>, vector<128x128xf32>
    %c0_2 = arith.constant 0 : index
    %c0_3 = arith.constant 0 : index
    %4 = vector.load %arg3[%c0_2, %c0_3] : memref<128x128xbf16, #tpu.memory_space<vmem>>, vector<128x128xbf16>
    %c0_4 = arith.constant 0 : index
    %c0_5 = arith.constant 0 : index
    %5 = vector.load %arg4[%c0_4, %c0_5] : memref<128x128xbf16, #tpu.memory_space<vmem>>, vector<128x128xbf16>
    %cst = arith.constant dense<0.000000e+00> : vector<128x128xf32>
    %6 = tpu.matmul %4, %5, %cst {dimension_numbers = #tpu.dot_dimension_numbers<[1], [0], [0], [1], [0, 0, 1, 1], [], []>} : vector<128x128xbf16>, vector<128x128xbf16>, vector<128x128xf32> -> vector<128x128xf32>
    %7 = arith.addf %3, %6 : vector<128x128xf32>
    %c0_6 = arith.constant 0 : index
    %c0_7 = arith.constant 0 : index
    %8 = vector.load %arg6[%c0_6, %c0_7] : memref<128x128xf32, #tpu.memory_space<vmem>>, vector<128x128xf32>
    tpu.vector_store %arg6[%c0_6, %c0_7], %7 {strides = array<i32>} : memref<128x128xf32, #tpu.memory_space<vmem>>, vector<128x128xf32>,
    return
  }
  func.func @transform_0(%arg0: i32, %arg1: i32, %arg2: i32) -> (i32, i32) {
    %c0_i32 = arith.constant 0 : i32
    return %arg1, %arg2 : i32, i32
  }
  func.func @transform_1(%arg0: i32, %arg1: i32, %arg2: i32) -> (i32, i32) {
    %c0_i32 = arith.constant 0 : i32
    return %arg2, %arg0 : i32, i32
  }
  func.func @transform_2(%arg0: i32, %arg1: i32, %arg2: i32) -> (i32, i32) {
    %c0_i32 = arith.constant 0 : i32
    %c0_i32_0 = arith.constant 0 : i32
    return %c0_i32, %arg0 : i32, i32
  }
  func.func @transform_3(%arg0: i32, %arg1: i32, %arg2: i32) -> (i32, i32) {
    %c0_i32 = arith.constant 0 : i32
    return %arg1, %arg0 : i32, i32
  }
}

</mosaic_0001>

<bundles_post_ra>
// kernel: tpu_custom_call.1
= control target key start
LH: loop header
LB: loop body
LE: loop exit
PB: predicated region body
PF: predicated region fallthrough
CT: control target
= control target key end

     0   :  { %8 = vsyncpa [#allocation3], 0  ;;  %s604_s0 = inlined_call_operand.hbm [shape: bf16[128,128], index: 0, kind: input, shape index: {}]   ;;  %s605_s1 = inlined_call_operand.hbm [shape: bf16[128,128], index: 1, kind: input, shape index: {}]   ;;  %s606_s2 = inlined_call_operand.vmem [shape: f32[1,128], index: 2, kind: input, shape index: {}]   ;;  %s607_s3 = inlined_call_operand.hbm [shape: f32[128,128], index: 3, kind: output, shape index: {}]  }
   0x1   :  { %9 = vsyncpa [#allocation6], 0 }
   0x2   :  { %10 = vsyncpa [#allocation4], 0  ;;  %s538_s12 = smov [#allocation2]   ;;  %s466_s16 = scalar_lea.hbm %s604_s0, 1024 }
   0x3   :  { %s16_s13 = sshll.u32 %s538_s12, 4  ;;  %p467_p0 = scmp.ne.s32.totalorder %s604_s0, %s466_s16  ;;  %s17_s13 = int_to_ptr.vmem [resolvable:$true] %s16_s13 }
   0x4   :  { %p470_p1 = scmp.lt.u32.totalorder %s466_s16, %s604_s0 }
   0x6   :  { %p472_p2 = pnand %p470_p1, %p467_p0 }
   0x8   :  { %475 = shalt.err (!%p472_p2)
}
   0x9   :  { %s476_s21 = scalar_lea.vmem %s17_s13, 1024  ;;  %p481_p4 = scmp.lt.s32.totalorder %s17_s13, %s17_s13 }
   0xa   :  { %p477_p3 = scmp.ne.s32.totalorder %s17_s13, %s476_s21  ;;  %p482_p5 = scmp.lt.s32.totalorder %s476_s21, %s476_s21 }
   0xc   :  { %p483_p6 = por %p482_p5, %p481_p4 }
   0xe   :  { %p484_p7 = pnand %p483_p6, %p477_p3 }
  0x10   :  { %487 = shalt.err (!%p484_p7)
}
  0x11   :  { %s539_s22 = smov 64   ;;  %s540_s23 = smov 4  }
  0x12   :  { %22 = dma.hbm_to_vmem [thread:$0]  %s604_s0, 1024, %s17_s13, [#allocation3], %s539_s22, %s539_s22, %s540_s23  }
  0x13   :  { %s541_s26 = smov [#allocation5]   ;;  %s488_s30 = scalar_lea.hbm %s605_s1, 1024 }
  0x14   :  { %s28_s27 = sshll.u32 %s541_s26, 4  ;;  %p489_p8 = scmp.ne.s32.totalorder %s605_s1, %s488_s30  ;;  %s29_s27 = int_to_ptr.vmem [resolvable:$true] %s28_s27 }
  0x15   :  { %p492_p9 = scmp.lt.u32.totalorder %s488_s30, %s605_s1 }
  0x17   :  { %p494_p10 = pnand %p492_p9, %p489_p8 }
  0x19   :  { %497 = shalt.err (!%p494_p10)
}
  0x1a   :  { %s498_s8 = scalar_lea.vmem %s29_s27, 1024  ;;  %p503_p12 = scmp.lt.s32.totalorder %s29_s27, %s29_s27 }
  0x1b   :  { %p499_p11 = scmp.ne.s32.totalorder %s29_s27, %s498_s8  ;;  %p504_p13 = scmp.lt.s32.totalorder %s498_s8, %s498_s8 }
  0x1d   :  { %p505_p0 = por %p504_p13, %p503_p12 }
  0x1f   :  { %p506_p1 = pnand %p505_p0, %p499_p11 }
  0x21   :  { %509 = shalt.err (!%p506_p1)
}
  0x22   :  { %34 = dma.hbm_to_vmem [thread:$0]  %s605_s1, 1024, %s29_s27, [#allocation6], %s539_s22, %s539_s22, %s540_s23  }
  0x23   :  { %532 = dma.done.wait [#allocation3], 1024  }
  0x24   :  { %533 = vsyncadd [#allocation3], 4294966272 }
  0x25   :  { %534 = dma.done.wait [#allocation6], 1024  }
  0x26   :  { %535 = vsyncadd [#allocation6], 4294966272  ;;  %v450_v0 = vld [vmem:[#allocation5] sm:$0xff]   ;;  %v451_v1 = vld [vmem:[#allocation5 + $0x8] sm:$0xff]  }
  0x27   :  { %395 = vmatprep.subr.bf16.mxu0 %v450_v0  ;;  %427 = vmatprep.subr.bf16.mxu1 %v450_v0  ;;  %v452_v2 = vld [vmem:[#allocation5 + $0x10] sm:$0xff]   ;;  %v453_v3 = vld [vmem:[#allocation5 + $0x18] sm:$0xff]   ;;  %v458_v4 = vld [vmem:[#allocation2] sm:$0xff]  }
  0x28   :  { %396 = vmatpush3.bf16.msra.mxu0 %v450_v0  ;;  %435 = vmatpush3.bf16.msra.mxu1 %v450_v0  ;;  %v459_v5 = vld [vmem:[#allocation2 + $0x20] sm:$0xff]   ;;  %v455_v7 = vld [vmem:[#allocation5 + $0x28] sm:$0xff]   ;;  %v456_v8 = vld [vmem:[#allocation5 + $0x30] sm:$0xff]  }
  0x29   :  { %397 = vmatprep.subr.bf16.mxu0 %v451_v1  ;;  %428 = vmatprep.subr.bf16.mxu1 %v451_v1  ;;  %v454_v6 = vld [vmem:[#allocation5 + $0x20] sm:$0xff]   ;;  %v457_v9 = vld [vmem:[#allocation5 + $0x38] sm:$0xff]   ;;  %v460_v10 = vld [vmem:[#allocation2 + $0x8] sm:$0xff]  }
  0x2a   :  { %411 = vmatprep.mubr.bf16.mxu0 %v458_v4  ;;  %419 = vmatprep.mubr.bf16.mxu1 %v459_v5  ;;  %v461_v11 = vld [vmem:[#allocation2 + $0x28] sm:$0xff]   ;;  %v462_v12 = vld [vmem:[#allocation2 + $0x10] sm:$0xff]   ;;  %v464_v14 = vld [vmem:[#allocation2 + $0x18] sm:$0xff]  }
  0x2b   :  { %v463_v13 = vld [vmem:[#allocation2 + $0x30] sm:$0xff]   ;;  %v465_v15 = vld [vmem:[#allocation2 + $0x38] sm:$0xff]   ;;  %v362_v16 = vld [vmem:[%s606_s2] ss:$0 sm:$0xff]  ;;  %s542_s2 = smov [#allocation7]  }
  0x2c   :  { %398 = vmatpush3.bf16.msra.mxu0 %v451_v1  ;;  %436 = vmatpush3.bf16.msra.mxu1 %v451_v1  ;;  %s349_s11 = sshll.u32 %s542_s2, 4  ;;  %s350_s11 = int_to_ptr.vmem [resolvable:$true] %s349_s11 }
  0x2d   :  { %399 = vmatprep.subr.bf16.mxu0 %v452_v2  ;;  %429 = vmatprep.subr.bf16.mxu1 %v452_v2  ;;  %s510_s12 = scalar_lea.vmem %s350_s11, 2048  ;;  %p515_p3 = scmp.lt.s32.totalorder %s350_s11, %s350_s11 }
  0x2e   :  { %p511_p2 = scmp.ne.s32.totalorder %s350_s11, %s510_s12  ;;  %p516_p4 = scmp.lt.s32.totalorder %s510_s12, %s510_s12 }
  0x30   :  { %400 = vmatpush3.bf16.msra.mxu0 %v452_v2  ;;  %437 = vmatpush3.bf16.msra.mxu1 %v452_v2  ;;  %p517_p5 = por %p516_p4, %p515_p3 }
  0x31   :  { %401 = vmatprep.subr.bf16.mxu0 %v453_v3  ;;  %430 = vmatprep.subr.bf16.mxu1 %v453_v3 }
  0x32   :  { %p518_p6 = pnand %p517_p5, %p511_p2 }
  0x34   :  { %402 = vmatpush3.bf16.msra.mxu0 %v453_v3  ;;  %438 = vmatpush3.bf16.msra.mxu1 %v453_v3 }
  0x35   :  { %403 = vmatprep.subr.bf16.mxu0 %v454_v6  ;;  %431 = vmatprep.subr.bf16.mxu1 %v454_v6 }
  0x38   :  { %404 = vmatpush3.bf16.msra.mxu0 %v454_v6  ;;  %439 = vmatpush3.bf16.msra.mxu1 %v454_v6 }
  0x39   :  { %405 = vmatprep.subr.bf16.mxu0 %v455_v7  ;;  %432 = vmatprep.subr.bf16.mxu1 %v455_v7 }
  0x3c   :  { %406 = vmatpush3.bf16.msra.mxu0 %v455_v7  ;;  %440 = vmatpush3.bf16.msra.mxu1 %v455_v7 }
  0x3d   :  { %407 = vmatprep.subr.bf16.mxu0 %v456_v8  ;;  %433 = vmatprep.subr.bf16.mxu1 %v456_v8 }
  0x40   :  { %408 = vmatpush3.bf16.msra.mxu0 %v456_v8  ;;  %441 = vmatpush3.bf16.msra.mxu1 %v456_v8 }
  0x41   :  { %409 = vmatprep.subr.bf16.mxu0 %v457_v9  ;;  %434 = vmatprep.subr.bf16.mxu1 %v457_v9 }
  0x44   :  { %410 = vmatpush3.bf16.msra.mxu0 %v457_v9  ;;  %442 = vmatpush3.bf16.msra.mxu1 %v457_v9 }
  0x47   :  { %412 = vmatmul.mubr.bf16.vlgmr.msra.gmra.mrb[0].mxu0 %v460_v10  ;;  %420 = vmatmul.mubr.bf16.vlgmr.msra.gmra.mrb[0].mxu1 %v461_v11 }
  0x48   :  { %415 = vmatprep.mubr.bf16.mxu0 %v462_v12  ;;  %423 = vmatprep.mubr.bf16.mxu1 %v463_v13 }
  0x4f   :  { %416 = vmatmul.mubr.bf16.gmra.mrb[4].mxu0 %v464_v14  ;;  %424 = vmatmul.mubr.bf16.gmra.mrb[4].mxu1 %v465_v15 }
 0x11a   :  { %v413_v17 = vpop.f32.mrb[0].mxu0  ;;  %v421_v18 = vpop.f32.mrb[0].mxu1 }
 0x11b   :  { %v314_v19 = vadd.f32 %v413_v17, %v362_v16  ;;  %v322_v20 = vadd.f32 %v421_v18, %v362_v16  ;;  %v249_v21 = vpop.f32.mrb[1].mxu0  ;;  %v281_v22 = vpop.f32.mrb[1].mxu1 }
 0x11c   :  { %v312_v23 = vadd.f32 %v362_v16, %v249_v21  ;;  %v320_v24 = vadd.f32 %v362_v16, %v281_v22  ;;  %v414_v25 = vpop.f32.mrb[2].mxu0  ;;  %v422_v26 = vpop.f32.mrb[2].mxu1 }
 0x11d   :  { %330 = vst [vmem:[#allocation7 + $0x10] sm:$0xff] %v314_v19  ;;  %338 = vst [vmem:[#allocation7 + $0x50] sm:$0xff] %v322_v20  ;;  %v315_v27 = vadd.f32 %v414_v25, %v362_v16  ;;  %v323_v28 = vadd.f32 %v422_v26, %v362_v16  ;;  %v252_v29 = vpop.f32.mrb[3].mxu0  ;;  %v284_v30 = vpop.f32.mrb[3].mxu1 }
 0x11e   :  { %328 = vst [vmem:[#allocation7] sm:$0xff] %v312_v23  ;;  %336 = vst [vmem:[#allocation7 + $0x40] sm:$0xff] %v320_v24  ;;  %v313_v31 = vadd.f32 %v362_v16, %v252_v29  ;;  %v321_v32 = vadd.f32 %v362_v16, %v284_v30 }
 0x11f   :  { %331 = vst [vmem:[#allocation7 + $0x18] sm:$0xff] %v315_v27  ;;  %339 = vst [vmem:[#allocation7 + $0x58] sm:$0xff] %v323_v28 }
 0x120   :  { %329 = vst [vmem:[#allocation7 + $0x8] sm:$0xff] %v313_v31  ;;  %337 = vst [vmem:[#allocation7 + $0x48] sm:$0xff] %v321_v32 }
 0x122   :  { %v417_v33 = vpop.f32.mrb[4].mxu0  ;;  %v425_v34 = vpop.f32.mrb[4].mxu1 }
 0x123   :  { %v318_v35 = vadd.f32 %v417_v33, %v362_v16  ;;  %v326_v36 = vadd.f32 %v425_v34, %v362_v16  ;;  %v265_v37 = vpop.f32.mrb[5].mxu0  ;;  %v297_v38 = vpop.f32.mrb[5].mxu1 }
 0x124   :  { %v316_v39 = vadd.f32 %v362_v16, %v265_v37  ;;  %v324_v40 = vadd.f32 %v362_v16, %v297_v38  ;;  %v418_v41 = vpop.f32.mrb[6].mxu0  ;;  %v426_v42 = vpop.f32.mrb[6].mxu1 }
 0x125   :  { %334 = vst [vmem:[#allocation7 + $0x30] sm:$0xff] %v318_v35  ;;  %342 = vst [vmem:[#allocation7 + $0x70] sm:$0xff] %v326_v36  ;;  %v319_v43 = vadd.f32 %v418_v41, %v362_v16  ;;  %v327_v44 = vadd.f32 %v426_v42, %v362_v16  ;;  %v268_v45 = vpop.f32.mrb[7].mxu0  ;;  %v300_v46 = vpop.f32.mrb[7].mxu1 }
 0x126   :  { %332 = vst [vmem:[#allocation7 + $0x20] sm:$0xff] %v316_v39  ;;  %340 = vst [vmem:[#allocation7 + $0x60] sm:$0xff] %v324_v40  ;;  %v317_v47 = vadd.f32 %v362_v16, %v268_v45  ;;  %v325_v48 = vadd.f32 %v362_v16, %v300_v46 }
 0x127   :  { %335 = vst [vmem:[#allocation7 + $0x38] sm:$0xff] %v319_v43  ;;  %343 = vst [vmem:[#allocation7 + $0x78] sm:$0xff] %v327_v44 }
 0x128   :  { %333 = vst [vmem:[#allocation7 + $0x28] sm:$0xff] %v317_v47  ;;  %341 = vst [vmem:[#allocation7 + $0x68] sm:$0xff] %v325_v48 }
 0x129   :  { %521 = shalt.err (!%p518_p6)
}
 0x12a   :  { %s522_s15 = scalar_lea.hbm %s607_s3, 2048 }
 0x12b   :  { %p523_p7 = scmp.ne.s32.totalorder %s607_s3, %s522_s15  ;;  %p526_p8 = scmp.lt.u32.totalorder %s522_s15, %s607_s3 }
 0x12d   :  { %p528_p9 = pnand %p526_p8, %p523_p7 }
 0x12f   :  { %531 = shalt.err (!%p528_p9)
}
 0x130   :  { %s543_s20 = smov 128   ;;  %s544_s21 = smov 8  }
 0x131   :  { %355 = dma.vmem_to_hbm [thread:$0]  %s350_s11, 2048, %s607_s3, [#allocation4], %s543_s20, %s543_s20, %s544_s21  }
 0x132   :  { %536 = dma.done.wait [#allocation4], 2048  }
 0x133   :  { %537 = vsyncadd [#allocation4], 4294965248 }
 0x134   :  { %359 = vsyncpa [#allocation3], 1 }
 0x135   :  { %360 = vsyncpa [#allocation6], 1 }
 0x136   :  { %361 = vsyncpa [#allocation4], 1 }

</bundles_post_ra>
